<compile_context>
chip_gen: v5e
topology: v5e:2x2
jax: 0.10.0
libtpu: 0.0.40
codegen_flags: <defaults>
</compile_context>

<pallas_src>
import functools

import jax
import jax.numpy as jnp
import numpy as np
from jax.experimental import pallas as pl
from jax.experimental.pallas import tpu as pltpu


# --------------------------- parameter preparation ---------------------------

def _band_weights_stacked(w_hwio, W):
    """(3,3,Ci,Co) HWIO conv weights -> (3*W*Ci, W*Co) stacked band matrix.

    Row index = ky*(W*Ci) + p*Ci + ci, col index = wo*Co + co, where
    p = wo + kx - 1 is the input column feeding output column wo through tap
    kx.  Entries whose input column p falls outside [0, W) stay zero, which
    implements the horizontal 'same' padding exactly.  Built once with numpy
    at parameter-prep time (hoisted out of the per-call jit).
    """
    w = np.asarray(w_hwio)
    kh, kw, Ci, Co = w.shape
    L_in, L_out = W * Ci, W * Co
    band = np.zeros((kh, L_in, L_out), dtype=w.dtype)
    for ky in range(kh):
        for kx in range(kw):
            for wo in range(W):
                p = wo + kx - (kw // 2)
                if 0 <= p < W:
                    band[ky, p * Ci:(p + 1) * Ci, wo * Co:(wo + 1) * Co] = w[ky, kx]
    return jnp.asarray(band.reshape(kh * L_in, L_out))


def prepare_params(params, W):
    """Precompute band weights + lane-tiled biases once (outside the forward)."""
    w1, b1, w2, b2 = params
    wb1 = _band_weights_stacked(w1, W)                       # (3*W*C, W*C)
    wb2 = _band_weights_stacked(w2, W)
    b1t = jnp.asarray(np.tile(np.asarray(b1), W)[None, :])   # (1, W*C), lane = w*C + c
    b2t = jnp.asarray(np.tile(np.asarray(b2), W)[None, :])
    return wb1, b1t, wb2, b2t


# --------------------------------- kernel -----------------------------------

def _make_fused_kernel(NB, H, L):
    """Fused kernel: conv1+SiLU -> conv2+SiLU -> +x, for NB images per step."""
    S = H + 2          # per-image stride in the halo-padded stack
    Mp = NB * S        # padded-stack rows
    Mc = Mp - 2        # rows over which the banded matmul is evaluated

    def kernel(x_ref, wb1_ref, b1_ref, wb2_ref, b2_ref, o_ref, xpad_ref):
        # xpad_ref: (Mp, L) halo-padded activation stack.  Only the two halo
        # rows per image are zeroed; data rows are always fully overwritten.
        zrow = jnp.zeros((1, L), jnp.float32)
        for n in range(NB):
            xpad_ref[pl.ds(n * S, 1), :] = zrow              # top halo, image n
            xpad_ref[pl.ds(n * S + H + 1, 1), :] = zrow      # bottom halo, image n

        x_all = x_ref[...].astype(jnp.float32)               # (NB*H, L)
        for n in range(NB):                                  # scatter into padded stack
            xpad_ref[pl.ds(n * S + 1, H), :] = x_all[n * H:(n + 1) * H]

        def conv_silu(wb_ref, b_ref):
            # One MXU matmul per conv: the 3 ky taps are packed along the LHS
            # lane dim (K = 3L) against the stacked (3L, L) band matrix, which
            # also encodes the horizontal 'same' padding as structural zeros.
            lhs = jnp.concatenate(
                [xpad_ref[pl.ds(0, Mc), :],      # row above  (ky = 0)
                 xpad_ref[pl.ds(1, Mc), :],      # center row (ky = 1)
                 xpad_ref[pl.ds(2, Mc), :]],     # row below  (ky = 2)
                axis=-1)                         # (Mc, 3L)
            z = jnp.dot(lhs, wb_ref[...], preferred_element_type=jnp.float32)
            z = z + b_ref[...]                   # (Mc, L) + (1, L)
            return z * jax.nn.sigmoid(z)         # SiLU (dropout p=0 -> identity)

        h = conv_silu(wb1_ref, b1_ref)           # rows at halo positions are garbage
        for n in range(NB):                      # write back data rows only;
            xpad_ref[pl.ds(n * S + 1, H), :] = h[n * S:n * S + H]   # halos stay zero

        y = conv_silu(wb2_ref, b2_ref)

        for n in range(NB):                      # fused residual add + store
            o_ref[pl.ds(n * H, H), :] = (
                y[n * S:n * S + H] + x_all[n * H:(n + 1) * H]
            ).astype(o_ref.dtype)

    return kernel


# -------------------------------- wrapper ------------------------------------

@functools.partial(jax.jit, static_argnames=("images_per_step",))
def resnet_block(x, prepared, *, images_per_step=None):
    """ResnetBlock forward: silu(conv2(silu(conv1(x)))) + x.

    x:        (N, H, W, C) float32, NHWC.
    prepared: output of prepare_params((w1, b1, w2, b2), W).
    images_per_step: images folded into each grid step.  Default: whole batch
              in ONE step (best on single-TC v5e/v6e).  On v7x, N//2 gives
              grid=(2,) "parallel" so each TensorCore takes half the batch.
    """
    wb1, b1t, wb2, b2t = prepared
    N, H, W, C = x.shape
    L = W * C
    NB = N if images_per_step is None else images_per_step
    assert N % NB == 0, "images_per_step must divide the batch"
    G = N // NB

    x2 = x.reshape(N * H, L)                     # lane-dense (rows, W*C) view
    kernel = _make_fused_kernel(NB, H, L)
    out = pl.pallas_call(
        kernel,
        out_shape=jax.ShapeDtypeStruct((N * H, L), x.dtype),
        grid=(G,),
        in_specs=[
            pl.BlockSpec((NB * H, L), lambda g: (g, 0)),    # activations
            pl.BlockSpec((3 * L, L), lambda g: (0, 0)),     # band weights conv1
            pl.BlockSpec((1, L), lambda g: (0, 0)),         # bias conv1 (lane-tiled)
            pl.BlockSpec((3 * L, L), lambda g: (0, 0)),     # band weights conv2
            pl.BlockSpec((1, L), lambda g: (0, 0)),         # bias conv2 (lane-tiled)
        ],
        out_specs=pl.BlockSpec((NB * H, L), lambda g: (g, 0)),
        scratch_shapes=[pltpu.VMEM((NB * (H + 2), L), jnp.float32)],
        compiler_params=pltpu.CompilerParams(
            dimension_semantics=("parallel",)),             # disjoint steps
    )(x2, wb1, b1t, wb2, b2t)
    return out.reshape(N, H, W, C)


# ------------------------- pure-JAX reference --------------------------------

def _ref_block(x, w, b):
    y = jax.lax.conv_general_dilated(
        x, w, window_strides=(1, 1), padding="SAME",
        dimension_numbers=("NHWC", "HWIO", "NHWC"))
    y = y + b[None, None, None, :]
    return y * jax.nn.sigmoid(y)


def _ref_resnet_block(x, params):
    w1, b1, w2, b2 = params
    h = _ref_block(x, w1, b1)
    h = _ref_block(h, w2, b2)
    return h + x


# ----------------------------------------------------------------------------

if __name__ == "__main__":
    # dim (= channels) = 8, 16x16 spatial -> W*C = 128 (lane-dense).
    # PyTorch-equivalent NCHW input shape: (2, 8, 16, 16).
    N, H, W, C = 2, 16, 16, 8

    key = jax.random.PRNGKey(0)
    kx_, kw1, kb1, kw2, kb2 = jax.random.split(key, 5)

    x = jax.random.normal(kx_, (N, H, W, C), dtype=jnp.float32)

    fan_in = C * 3 * 3
    w1 = jax.random.normal(kw1, (3, 3, C, C), dtype=jnp.float32) / np.sqrt(fan_in)
    b1 = jax.random.normal(kb1, (C,), dtype=jnp.float32) * 0.1
    w2 = jax.random.normal(kw2, (3, 3, C, C), dtype=jnp.float32) / np.sqrt(fan_in)
    b2 = jax.random.normal(kb2, (C,), dtype=jnp.float32) * 0.1
    params = (w1, b1, w2, b2)

    prepared = prepare_params(params, W)   # one-time: band weights + tiled biases

    out = jax.block_until_ready(resnet_block(x, prepared))
    ref = jax.block_until_ready(_ref_resnet_block(x, params))
    np.testing.assert_allclose(np.asarray(out), np.asarray(ref),
                               rtol=1e-4, atol=1e-4)

    print("KERNEL_OK")
</pallas_src>

<mosaic_0001>
module attributes {stable_mosaic.version = 11 : i64} {
  func.func @kernel(%arg0: i32, %arg1: memref<32x128xf32, #tpu.memory_space<vmem>>, %arg2: memref<384x128xf32, #tpu.memory_space<vmem>>, %arg3: memref<1x128xf32, #tpu.memory_space<vmem>>, %arg4: memref<384x128xf32, #tpu.memory_space<vmem>>, %arg5: memref<1x128xf32, #tpu.memory_space<vmem>>, %arg6: memref<32x128xf32, #tpu.memory_space<vmem>>, %arg7: memref<36x128xf32, #tpu.memory_space<vmem>>) attributes {dimension_semantics = [#tpu.dimension_semantics<parallel>], iteration_bounds = array<i64: 1>, scalar_prefetch = 0 : i64, scratch_operands = 1 : i64, tpu.core_type = #tpu.core_type<tc>, window_params = [{transform_indices = @transform_0, window_bounds = array<i64: 32, 128>}, {pipeline_mode = #tpu.pipeline_mode<synchronous>, transform_indices = @transform_1, window_bounds = array<i64: 384, 128>}, {pipeline_mode = #tpu.pipeline_mode<synchronous>, transform_indices = @transform_2, window_bounds = array<i64: 1, 128>}, {pipeline_mode = #tpu.pipeline_mode<synchronous>, transform_indices = @transform_3, window_bounds = array<i64: 384, 128>}, {pipeline_mode = #tpu.pipeline_mode<synchronous>, transform_indices = @transform_4, window_bounds = array<i64: 1, 128>}, {transform_indices = @transform_5, window_bounds = array<i64: 32, 128>}]} {
    %cst = arith.constant 0.000000e+00 : f32
    %0 = vector.broadcast %cst : f32 to vector<1x128xf32>
    %c0 = arith.constant 0 : index
    %c0_0 = arith.constant 0 : index
    %1 = vector.load %arg7[%c0, %c0_0] : memref<36x128xf32, #tpu.memory_space<vmem>>, vector<1x128xf32>
    tpu.vector_store %arg7[%c0, %c0_0], %0 {strides = array<i32>} : memref<36x128xf32, #tpu.memory_space<vmem>>, vector<1x128xf32>,
    %c17 = arith.constant 17 : index
    %c0_1 = arith.constant 0 : index
    %2 = vector.load %arg7[%c17, %c0_1] : memref<36x128xf32, #tpu.memory_space<vmem>>, vector<1x128xf32>
    tpu.vector_store %arg7[%c17, %c0_1], %0 {strides = array<i32>} : memref<36x128xf32, #tpu.memory_space<vmem>>, vector<1x128xf32>,
    %c18 = arith.constant 18 : index
    %c0_2 = arith.constant 0 : index
    %3 = vector.load %arg7[%c18, %c0_2] : memref<36x128xf32, #tpu.memory_space<vmem>>, vector<1x128xf32>
    tpu.vector_store %arg7[%c18, %c0_2], %0 {strides = array<i32>} : memref<36x128xf32, #tpu.memory_space<vmem>>, vector<1x128xf32>,
    %c35 = arith.constant 35 : index
    %c0_3 = arith.constant 0 : index
    %4 = vector.load %arg7[%c35, %c0_3] : memref<36x128xf32, #tpu.memory_space<vmem>>, vector<1x128xf32>
    tpu.vector_store %arg7[%c35, %c0_3], %0 {strides = array<i32>} : memref<36x128xf32, #tpu.memory_space<vmem>>, vector<1x128xf32>,
    %c0_4 = arith.constant 0 : index
    %c0_5 = arith.constant 0 : index
    %5 = vector.load %arg1[%c0_4, %c0_5] : memref<32x128xf32, #tpu.memory_space<vmem>>, vector<32x128xf32>
    %6 = vector.extract_strided_slice %5 {offsets = [0, 0], sizes = [16, 128], strides = [1, 1]} : vector<32x128xf32> to vector<16x128xf32>
    %c1 = arith.constant 1 : index
    %c0_6 = arith.constant 0 : index
    %7 = vector.load %arg7[%c1, %c0_6] : memref<36x128xf32, #tpu.memory_space<vmem>>, vector<16x128xf32>
    tpu.vector_store %arg7[%c1, %c0_6], %6 {strides = array<i32>} : memref<36x128xf32, #tpu.memory_space<vmem>>, vector<16x128xf32>,
    %8 = vector.extract_strided_slice %5 {offsets = [16, 0], sizes = [16, 128], strides = [1, 1]} : vector<32x128xf32> to vector<16x128xf32>
    %c19 = arith.constant 19 : index
    %c0_7 = arith.constant 0 : index
    %9 = vector.load %arg7[%c19, %c0_7] : memref<36x128xf32, #tpu.memory_space<vmem>>, vector<16x128xf32>
    tpu.vector_store %arg7[%c19, %c0_7], %8 {strides = array<i32>} : memref<36x128xf32, #tpu.memory_space<vmem>>, vector<16x128xf32>,
    %c0_8 = arith.constant 0 : index
    %c0_9 = arith.constant 0 : index
    %10 = vector.load %arg7[%c0_8, %c0_9] : memref<36x128xf32, #tpu.memory_space<vmem>>, vector<34x128xf32>
    %c1_10 = arith.constant 1 : index
    %c0_11 = arith.constant 0 : index
    %11 = vector.load %arg7[%c1_10, %c0_11] : memref<36x128xf32, #tpu.memory_space<vmem>>, vector<34x128xf32>
    %c2 = arith.constant 2 : index
    %c0_12 = arith.constant 0 : index
    %12 = vector.load %arg7[%c2, %c0_12] : memref<36x128xf32, #tpu.memory_space<vmem>>, vector<34x128xf32>
    %13 = tpu.concatenate %10, %11, %12 in 1 : vector<34x128xf32>, vector<34x128xf32>, vector<34x128xf32> -> vector<34x384xf32>
    %c0_13 = arith.constant 0 : index
    %c0_14 = arith.constant 0 : index
    %14 = vector.load %arg2[%c0_13, %c0_14] : memref<384x128xf32, #tpu.memory_space<vmem>>, vector<384x128xf32>
    %cst_15 = arith.constant dense<0.000000e+00> : vector<34x128xf32>
    %15 = tpu.matmul %13, %14, %cst_15 {dimension_numbers = #tpu.dot_dimension_numbers<[1], [0], [0], [1], [0, 0, 1, 1], [], []>} : vector<34x384xf32>, vector<384x128xf32>, vector<34x128xf32> -> vector<34x128xf32>
    %c0_16 = arith.constant 0 : index
    %c0_17 = arith.constant 0 : index
    %16 = vector.load %arg3[%c0_16, %c0_17] : memref<1x128xf32, #tpu.memory_space<vmem>>, vector<1x128xf32>
    %17 = vector.broadcast %16 : vector<1x128xf32> to vector<34x128xf32>
    %18 = arith.addf %15, %17 : vector<34x128xf32>
    %19 = arith.negf %18 : vector<34x128xf32>
    %20 = math.exp %19 : vector<34x128xf32>
    %cst_18 = arith.constant 1.000000e+00 : f32
    %21 = vector.broadcast %cst_18 : f32 to vector<34x128xf32>
    %22 = arith.addf %21, %20 : vector<34x128xf32>
    %23 = arith.divf %21, %22 : vector<34x128xf32>
    %24 = arith.mulf %18, %23 : vector<34x128xf32>
    %25 = vector.extract_strided_slice %24 {offsets = [0, 0], sizes = [16, 128], strides = [1, 1]} : vector<34x128xf32> to vector<16x128xf32>
    %c1_19 = arith.constant 1 : index
    %c0_20 = arith.constant 0 : index
    %26 = vector.load %arg7[%c1_19, %c0_20] : memref<36x128xf32, #tpu.memory_space<vmem>>, vector<16x128xf32>
    tpu.vector_store %arg7[%c1_19, %c0_20], %25 {strides = array<i32>} : memref<36x128xf32, #tpu.memory_space<vmem>>, vector<16x128xf32>,
    %27 = vector.extract_strided_slice %24 {offsets = [18, 0], sizes = [16, 128], strides = [1, 1]} : vector<34x128xf32> to vector<16x128xf32>
    %c19_21 = arith.constant 19 : index
    %c0_22 = arith.constant 0 : index
    %28 = vector.load %arg7[%c19_21, %c0_22] : memref<36x128xf32, #tpu.memory_space<vmem>>, vector<16x128xf32>
    tpu.vector_store %arg7[%c19_21, %c0_22], %27 {strides = array<i32>} : memref<36x128xf32, #tpu.memory_space<vmem>>, vector<16x128xf32>,
    %c0_23 = arith.constant 0 : index
    %c0_24 = arith.constant 0 : index
    %29 = vector.load %arg7[%c0_23, %c0_24] : memref<36x128xf32, #tpu.memory_space<vmem>>, vector<34x128xf32>
    %c1_25 = arith.constant 1 : index
    %c0_26 = arith.constant 0 : index
    %30 = vector.load %arg7[%c1_25, %c0_26] : memref<36x128xf32, #tpu.memory_space<vmem>>, vector<34x128xf32>
    %c2_27 = arith.constant 2 : index
    %c0_28 = arith.constant 0 : index
    %31 = vector.load %arg7[%c2_27, %c0_28] : memref<36x128xf32, #tpu.memory_space<vmem>>, vector<34x128xf32>
    %32 = tpu.concatenate %29, %30, %31 in 1 : vector<34x128xf32>, vector<34x128xf32>, vector<34x128xf32> -> vector<34x384xf32>
    %c0_29 = arith.constant 0 : index
    %c0_30 = arith.constant 0 : index
    %33 = vector.load %arg4[%c0_29, %c0_30] : memref<384x128xf32, #tpu.memory_space<vmem>>, vector<384x128xf32>
    %cst_31 = arith.constant dense<0.000000e+00> : vector<34x128xf32>
    %34 = tpu.matmul %32, %33, %cst_31 {dimension_numbers = #tpu.dot_dimension_numbers<[1], [0], [0], [1], [0, 0, 1, 1], [], []>} : vector<34x384xf32>, vector<384x128xf32>, vector<34x128xf32> -> vector<34x128xf32>
    %c0_32 = arith.constant 0 : index
    %c0_33 = arith.constant 0 : index
    %35 = vector.load %arg5[%c0_32, %c0_33] : memref<1x128xf32, #tpu.memory_space<vmem>>, vector<1x128xf32>
    %36 = vector.broadcast %35 : vector<1x128xf32> to vector<34x128xf32>
    %37 = arith.addf %34, %36 : vector<34x128xf32>
    %38 = arith.negf %37 : vector<34x128xf32>
    %39 = math.exp %38 : vector<34x128xf32>
    %cst_34 = arith.constant 1.000000e+00 : f32
    %40 = vector.broadcast %cst_34 : f32 to vector<34x128xf32>
    %41 = arith.addf %40, %39 : vector<34x128xf32>
    %42 = arith.divf %40, %41 : vector<34x128xf32>
    %43 = arith.mulf %37, %42 : vector<34x128xf32>
    %44 = vector.extract_strided_slice %43 {offsets = [0, 0], sizes = [16, 128], strides = [1, 1]} : vector<34x128xf32> to vector<16x128xf32>
    %45 = vector.extract_strided_slice %5 {offsets = [0, 0], sizes = [16, 128], strides = [1, 1]} : vector<32x128xf32> to vector<16x128xf32>
    %46 = arith.addf %44, %45 : vector<16x128xf32>
    %c0_35 = arith.constant 0 : index
    %c0_36 = arith.constant 0 : index
    %47 = vector.load %arg6[%c0_35, %c0_36] : memref<32x128xf32, #tpu.memory_space<vmem>>, vector<16x128xf32>
    tpu.vector_store %arg6[%c0_35, %c0_36], %46 {strides = array<i32>} : memref<32x128xf32, #tpu.memory_space<vmem>>, vector<16x128xf32>,
    %48 = vector.extract_strided_slice %43 {offsets = [18, 0], sizes = [16, 128], strides = [1, 1]} : vector<34x128xf32> to vector<16x128xf32>
    %49 = vector.extract_strided_slice %5 {offsets = [16, 0], sizes = [16, 128], strides = [1, 1]} : vector<32x128xf32> to vector<16x128xf32>
    %50 = arith.addf %48, %49 : vector<16x128xf32>
    %c16 = arith.constant 16 : index
    %c0_37 = arith.constant 0 : index
    %51 = vector.load %arg6[%c16, %c0_37] : memref<32x128xf32, #tpu.memory_space<vmem>>, vector<16x128xf32>
    tpu.vector_store %arg6[%c16, %c0_37], %50 {strides = array<i32>} : memref<32x128xf32, #tpu.memory_space<vmem>>, vector<16x128xf32>,
    return
  }
  func.func @transform_0(%arg0: i32) -> (i32, i32) {
    %c0_i32 = arith.constant 0 : i32
    %c0_i32_0 = arith.constant 0 : i32
    return %arg0, %c0_i32 : i32, i32
  }
  func.func @transform_1(%arg0: i32) -> (i32, i32) {
    %c0_i32 = arith.constant 0 : i32
    %c0_i32_0 = arith.constant 0 : i32
    %c0_i32_1 = arith.constant 0 : i32
    return %c0_i32, %c0_i32_0 : i32, i32
  }
  func.func @transform_2(%arg0: i32) -> (i32, i32) {
    %c0_i32 = arith.constant 0 : i32
    %c0_i32_0 = arith.constant 0 : i32
    %c0_i32_1 = arith.constant 0 : i32
    return %c0_i32, %c0_i32_0 : i32, i32
  }
  func.func @transform_3(%arg0: i32) -> (i32, i32) {
    %c0_i32 = arith.constant 0 : i32
    %c0_i32_0 = arith.constant 0 : i32
    %c0_i32_1 = arith.constant 0 : i32
    return %c0_i32, %c0_i32_0 : i32, i32
  }
  func.func @transform_4(%arg0: i32) -> (i32, i32) {
    %c0_i32 = arith.constant 0 : i32
    %c0_i32_0 = arith.constant 0 : i32
    %c0_i32_1 = arith.constant 0 : i32
    return %c0_i32, %c0_i32_0 : i32, i32
  }
  func.func @transform_5(%arg0: i32) -> (i32, i32) {
    %c0_i32 = arith.constant 0 : i32
    %c0_i32_0 = arith.constant 0 : i32
    return %arg0, %c0_i32 : i32, i32
  }
}

</mosaic_0001>

<bundles_post_ra>
// kernel: resnet_block.1
= control target key start
LH: loop header
LB: loop body
LE: loop exit
PB: predicated region body
PF: predicated region fallthrough
CT: control target
= control target key end

     0   :  { %v671_v3 = vmov 0.0   ;;  %s1143_s1 = inlined_call_operand.vmem [shape: f32[384,128], index: 1, kind: input, shape index: {}]   ;;  %s1144_s0 = inlined_call_operand.vmem [shape: f32[32,128], index: 0, kind: input, shape index: {}]   ;;  %s1145_s2 = inlined_call_operand.vmem [shape: f32[1,128], index: 2, kind: input, shape index: {}]   ;;  %s1146_s3 = inlined_call_operand.vmem [shape: f32[384,128], index: 3, kind: input, shape index: {}]   ;;  %s1147_s4 = inlined_call_operand.vmem [shape: f32[1,128], index: 4, kind: input, shape index: {}]   ;;  %s1148_s5 = inlined_call_operand.vmem [shape: f32[32,128], index: 5, kind: output, shape index: {}]  }
   0x1   :  { %v94_v0 = vld [vmem:[%s1143_s1 + $0x178] sm:$0xff]  ;;  %v93_v2 = vld [vmem:[%s1143_s1 + $0x170] sm:$0xff]  ;;  %20 = vst [vmem:[#allocation2] sm:$0x1] %v671_v3  ;;  %v92_v6 = vld [vmem:[%s1143_s1 + $0x168] sm:$0xff] }
   0x2   :  { %v62_v1 = vld [vmem:[%s1143_s1 + $0x78] sm:$0xff]  ;;  %163 = vmatpush.msra.mxu2 %v94_v0  ;;  %v61_v4 = vld [vmem:[%s1143_s1 + $0x70] sm:$0xff]  ;;  %21 = vst [vmem:[#allocation2 + $0x11] sm:$0x1] %v671_v3  ;;  %v60_v7 = vld [vmem:[%s1143_s1 + $0x68] sm:$0xff] }
   0x3   :  { %99 = vmatpush.msra.mxu0 %v62_v1  ;;  %v78_v5 = vld [vmem:[%s1143_s1 + $0xf8] sm:$0xff]  ;;  %v77_v8 = vld [vmem:[%s1143_s1 + $0xf0] sm:$0xff]  ;;  %22 = vst [vmem:[#allocation2 + $0x12] sm:$0x1] %v671_v3  ;;  %v76_v9 = vld [vmem:[%s1143_s1 + $0xe8] sm:$0xff] }
   0x4   :  { %131 = vmatpush.msra.mxu1 %v78_v5  ;;  %164 = vmatpush.msra.mxu2 %v93_v2  ;;  %23 = vst [vmem:[#allocation2 + $0x23] sm:$0x1] %v671_v3  ;;  %v91_v10 = vld [vmem:[%s1143_s1 + $0x160] sm:$0xff]  ;;  %v90_v13 = vld [vmem:[%s1143_s1 + $0x158] sm:$0xff]  ;;  %v89_v16 = vld [vmem:[%s1143_s1 + $0x150] sm:$0xff] }
   0x5   :  { %100 = vmatpush.msra.mxu0 %v61_v4  ;;  %v59_v11 = vld [vmem:[%s1143_s1 + $0x60] sm:$0xff]  ;;  %v58_v14 = vld [vmem:[%s1143_s1 + $0x58] sm:$0xff]  ;;  %v57_v17 = vld [vmem:[%s1143_s1 + $0x50] sm:$0xff] }
   0x6   :  { %132 = vmatpush.msra.mxu1 %v77_v8  ;;  %165 = vmatpush.msra.mxu2 %v92_v6  ;;  %v75_v12 = vld [vmem:[%s1143_s1 + $0xe0] sm:$0xff]  ;;  %v74_v15 = vld [vmem:[%s1143_s1 + $0xd8] sm:$0xff]  ;;  %v73_v18 = vld [vmem:[%s1143_s1 + $0xd0] sm:$0xff] }
   0x7   :  { %101 = vmatpush.msra.mxu0 %v60_v7  ;;  %v88_v19 = vld [vmem:[%s1143_s1 + $0x148] sm:$0xff]  ;;  %v87_v22 = vld [vmem:[%s1143_s1 + $0x140] sm:$0xff]  ;;  %v86_v25 = vld [vmem:[%s1143_s1 + $0x138] sm:$0xff] }
   0x8   :  { %133 = vmatpush.msra.mxu1 %v76_v9  ;;  %166 = vmatpush.msra.mxu2 %v91_v10  ;;  %v56_v20 = vld [vmem:[%s1143_s1 + $0x48] sm:$0xff]  ;;  %v55_v23 = vld [vmem:[%s1143_s1 + $0x40] sm:$0xff]  ;;  %v54_v26 = vld [vmem:[%s1143_s1 + $0x38] sm:$0xff] }
   0x9   :  { %102 = vmatpush.msra.mxu0 %v59_v11  ;;  %v72_v21 = vld [vmem:[%s1143_s1 + $0xc8] sm:$0xff]  ;;  %v71_v24 = vld [vmem:[%s1143_s1 + $0xc0] sm:$0xff]  ;;  %v70_v27 = vld [vmem:[%s1143_s1 + $0xb8] sm:$0xff] }
   0xa   :  { %134 = vmatpush.msra.mxu1 %v75_v12  ;;  %167 = vmatpush.msra.mxu2 %v90_v13  ;;  %v786_v28 = vld [vmem:[%s1144_s0] sm:$0xff]  ;;  %v791_v29 = vld [vmem:[%s1144_s0 + $0x8] sm:$0xff]  ;;  %v85_v30 = vld [vmem:[%s1143_s1 + $0x130] sm:$0xff] }
   0xb   :  { %103 = vmatpush.msra.mxu0 %v58_v14  ;;  %v53_v31 = vld [vmem:[%s1143_s1 + $0x30] sm:$0xff]  ;;  %28 = vst [vmem:[#allocation2 + $0x1] sm:$0xff] %v786_v28  ;;  %v812_v34 = vld [vmem:[%s1144_s0 + $0x18] sm:$0xff]  ;;  %v84_v35 = vld [vmem:[%s1143_s1 + $0x128] sm:$0xff] }
   0xc   :  { %135 = vmatpush.msra.mxu1 %v74_v15  ;;  %168 = vmatpush.msra.mxu2 %v89_v16  ;;  %v803_v32 = vld [vmem:[%s1144_s0 + $0x10] sm:$0xff]  ;;  %29 = vst [vmem:[#allocation2 + $0x9] sm:$0xff] %v791_v29  ;;  %v52_v36 = vld [vmem:[%s1143_s1 + $0x28] sm:$0xff]  ;;  %v83_v38 = vld [vmem:[%s1143_s1 + $0x120] sm:$0xff] }
   0xd   :  { %104 = vmatpush.msra.mxu0 %v57_v17  ;;  %v69_v33 = vld [vmem:[%s1143_s1 + $0xb0] sm:$0xff]  ;;  %30 = vst [vmem:[#allocation2 + $0x13] sm:$0xff] %v803_v32  ;;  %v68_v37 = vld [vmem:[%s1143_s1 + $0xa8] sm:$0xff]  ;;  %v51_v39 = vld [vmem:[%s1143_s1 + $0x20] sm:$0xff] }
   0xe   :  { %136 = vmatpush.msra.mxu1 %v73_v18  ;;  %169 = vmatpush.msra.mxu2 %v88_v19  ;;  %31 = vst [vmem:[#allocation2 + $0x1b] sm:$0xff] %v812_v34  ;;  %v67_v40 = vld [vmem:[%s1143_s1 + $0xa0] sm:$0xff]  ;;  %v82_v41 = vld [vmem:[%s1143_s1 + $0x118] sm:$0xff]  ;;  %v81_v44 = vld [vmem:[%s1143_s1 + $0x110] sm:$0xff] }
   0xf   :  { %105 = vmatpush.msra.mxu0 %v56_v20  ;;  %v50_v42 = vld [vmem:[%s1143_s1 + $0x18] sm:$0xff]  ;;  %v49_v45 = vld [vmem:[%s1143_s1 + $0x10] sm:$0xff]  ;;  %v80_v47 = vld [vmem:[%s1143_s1 + $0x108] sm:$0xff] }
  0x10   :  { %137 = vmatpush.msra.mxu1 %v72_v21  ;;  %170 = vmatpush.msra.mxu2 %v87_v22  ;;  %v66_v43 = vld [vmem:[%s1143_s1 + $0x98] sm:$0xff]  ;;  %v65_v46 = vld [vmem:[%s1143_s1 + $0x90] sm:$0xff]  ;;  %v48_v48 = vld [vmem:[%s1143_s1 + $0x8] sm:$0xff] }
  0x11   :  { %106 = vmatpush.msra.mxu0 %v55_v23  ;;  %v64_v49 = vld [vmem:[%s1143_s1 + $0x88] sm:$0xff]  ;;  %v79_v50 = vld [vmem:[%s1143_s1 + $0x100] sm:$0xff]  ;;  %v346_v2 = vld [vmem:[%s1146_s3 + $0xf8] sm:$0xff] }
  0x12   :  { %138 = vmatpush.msra.mxu1 %v71_v24  ;;  %171 = vmatpush.msra.mxu2 %v86_v25  ;;  %v47_v51 = vld [vmem:[%s1143_s1] sm:$0xff]  ;;  %v345_v3 = vld [vmem:[%s1146_s3 + $0xf0] sm:$0xff]  ;;  %v344_v4 = vld [vmem:[%s1146_s3 + $0xe8] sm:$0xff] }
  0x13   :  { %107 = vmatpush.msra.mxu0 %v54_v26  ;;  %v42_v52 = vld [vmem:[#allocation2 + $0x2] sm:$0xff]  ;;  %v43_v55 = vld [vmem:[#allocation2 + $0xa] sm:$0xff]  ;;  %v330_v6 = vld [vmem:[%s1146_s3 + $0x78] sm:$0xff] }
  0x14   :  { %139 = vmatpush.msra.mxu1 %v70_v27  ;;  %172 = vmatpush.msra.mxu2 %v85_v30  ;;  %v32_v53 = vld [vmem:[#allocation2] sm:$0xff]  ;;  %v33_v56 = vld [vmem:[#allocation2 + $0x8] sm:$0xff]  ;;  %v44_v57 = vld [vmem:[#allocation2 + $0x12] sm:$0xff] }
  0x15   :  { %108 = vmatpush.msra.mxu0 %v53_v31  ;;  %v63_v54 = vld [vmem:[%s1143_s1 + $0x80] sm:$0xff]  ;;  %v34_v58 = vld [vmem:[#allocation2 + $0x10] sm:$0xff]  ;;  %v35_v61 = vld [vmem:[#allocation2 + $0x18] sm:$0xff]  ;;  %367 = vmatpush.msra.mxu3 %v330_v6 }
  0x16   :  { %140 = vmatpush.msra.mxu1 %v69_v33  ;;  %173 = vmatpush.msra.mxu2 %v84_v35  ;;  %v39_v59 = vld [vmem:[#allocation2 + $0x11] sm:$0xff]  ;;  %v45_v60 = vld [vmem:[#allocation2 + $0x1a] sm:$0xff]  ;;  %v46_v63 = vld [vmem:[#allocation2 + $0x22] sm:$0x3] }
  0x17   :  { %109 = vmatpush.msra.mxu0 %v52_v36  ;;  %v40_v62 = vld [vmem:[#allocation2 + $0x19] sm:$0xff]  ;;  %v41_v1 = vld [vmem:[#allocation2 + $0x21] sm:$0x3]  ;;  %v329_v8 = vld [vmem:[%s1146_s3 + $0x70] sm:$0xff] }
  0x18   :  { %141 = vmatpush.msra.mxu1 %v68_v37  ;;  %174 = vmatpush.msra.mxu2 %v83_v38  ;;  %v36_v0 = vld [vmem:[#allocation2 + $0x20] sm:$0x3]  ;;  %v342_v7 = vld [vmem:[%s1146_s3 + $0xd8] sm:$0xff]  ;;  %v341_v9 = vld [vmem:[%s1146_s3 + $0xd0] sm:$0xff] }
  0x19   :  { %110 = vmatpush.msra.mxu0 %v51_v39  ;;  %v343_v5 = vld [vmem:[%s1146_s3 + $0xe0] sm:$0xff]  ;;  %368 = vmatpush.msra.mxu3 %v329_v8  ;;  %v328_v10 = vld [vmem:[%s1146_s3 + $0x68] sm:$0xff]  ;;  %v326_v14 = vld [vmem:[%s1146_s3 + $0x58] sm:$0xff] }
  0x1a   :  { %142 = vmatpush.msra.mxu1 %v67_v40  ;;  %175 = vmatpush.msra.mxu2 %v82_v41  ;;  %v340_v11 = vld [vmem:[%s1146_s3 + $0xc8] sm:$0xff]  ;;  %v327_v12 = vld [vmem:[%s1146_s3 + $0x60] sm:$0xff]  ;;  %v914_v15 = vld [vmem:[%s1146_s3 + $0x178] sm:$0xff] }
  0x1b   :  { %111 = vmatpush.msra.mxu0 %v50_v42  ;;  %369 = vmatpush.msra.mxu3 %v328_v10  ;;  %v339_v13 = vld [vmem:[%s1146_s3 + $0xc0] sm:$0xff]  ;;  %v338_v16 = vld [vmem:[%s1146_s3 + $0xb8] sm:$0xff]  ;;  %v325_v17 = vld [vmem:[%s1146_s3 + $0x50] sm:$0xff] }
  0x1c   :  { %143 = vmatpush.msra.mxu1 %v66_v43  ;;  %176 = vmatpush.msra.mxu2 %v81_v44  ;;  %v926_v18 = vld [vmem:[%s1146_s3 + $0x170] sm:$0xff]  ;;  %v324_v20 = vld [vmem:[%s1146_s3 + $0x48] sm:$0xff]  ;;  %v946_v23 = vld [vmem:[%s1145_s2] ss:$0 sm:$0xff] }
  0x1d   :  { %112 = vmatpush.msra.mxu0 %v49_v45  ;;  %370 = vmatpush.msra.mxu3 %v327_v12  ;;  %v337_v19 = vld [vmem:[%s1146_s3 + $0xb0] sm:$0xff]  ;;  %v938_v21 = vld [vmem:[%s1146_s3 + $0x168] sm:$0xff]  ;;  %v323_v24 = vld [vmem:[%s1146_s3 + $0x40] sm:$0xff] }
  0x1e   :  { %144 = vmatpush.msra.mxu1 %v65_v46  ;;  %177 = vmatpush.msra.mxu2 %v80_v47  ;;  %v336_v22 = vld [vmem:[%s1146_s3 + $0xa8] sm:$0xff]  ;;  %v955_v25 = vld [vmem:[%s1146_s3 + $0x160] sm:$0xff]  ;;  %v322_v30 = vld [vmem:[%s1146_s3 + $0x38] sm:$0xff] }
  0x1f   :  { %113 = vmatpush.msra.mxu0 %v48_v48  ;;  %371 = vmatpush.msra.mxu3 %v326_v14  ;;  %v335_v26 = vld [vmem:[%s1146_s3 + $0xa0] sm:$0xff]  ;;  %v967_v31 = vld [vmem:[%s1146_s3 + $0x158] sm:$0xff]  ;;  %v321_v37 = vld [vmem:[%s1146_s3 + $0x30] sm:$0xff] }
  0x20   :  { %145 = vmatpush.msra.mxu1 %v64_v49  ;;  %178 = vmatpush.msra.mxu2 %v79_v50  ;;  %v334_v33 = vld [vmem:[%s1146_s3 + $0x98] sm:$0xff]  ;;  %v980_v38 = vld [vmem:[%s1146_s3 + $0x150] sm:$0xff]  ;;  %v320_v41 = vld [vmem:[%s1146_s3 + $0x28] sm:$0xff] }
  0x21   :  { %114 = vmatpush.msra.mxu0 %v47_v51  ;;  %179 = vmatmul.f32.vlgmr.msra.gmra.mxu2 %v42_v52  ;;  %v333_v39 = vld [vmem:[%s1146_s3 + $0x90] sm:$0xff]  ;;  %v992_v42 = vld [vmem:[%s1146_s3 + $0x148] sm:$0xff]  ;;  %v319_v45 = vld [vmem:[%s1146_s3 + $0x20] sm:$0xff] }
  0x22   :  { %115 = vmatmul.f32.vlgmr.msra.gmra.mxu0 %v32_v53  ;;  %146 = vmatpush.msra.mxu1 %v63_v54  ;;  %v332_v43 = vld [vmem:[%s1146_s3 + $0x88] sm:$0xff]  ;;  %v1004_v46 = vld [vmem:[%s1146_s3 + $0x140] sm:$0xff]  ;;  %v318_v50 = vld [vmem:[%s1146_s3 + $0x18] sm:$0xff] }
  0x23   :  { %147 = vmatmul.f32.vlgmr.msra.gmra.mxu1 %v786_v28  ;;  %399 = vmatpush.msrb.mxu0 %v346_v2  ;;  %v331_v47 = vld [vmem:[%s1146_s3 + $0x80] sm:$0xff]  ;;  %v1018_v51 = vld [vmem:[%s1146_s3 + $0x138] sm:$0xff] }
  0x24   :  { %596 = vmatpush.msrb.mxu2 %v346_v2  ;;  %431 = vmatpush.msrb.mxu1 %v914_v15 }
  0x25   :  { %400 = vmatpush.msrb.mxu0 %v345_v3  ;;  %372 = vmatpush.msra.mxu3 %v325_v17 }
  0x26   :  { %597 = vmatpush.msrb.mxu2 %v345_v3  ;;  %432 = vmatpush.msrb.mxu1 %v926_v18 }
  0x27   :  { %401 = vmatpush.msrb.mxu0 %v344_v4  ;;  %373 = vmatpush.msra.mxu3 %v324_v20 }
  0x28   :  { %598 = vmatpush.msrb.mxu2 %v344_v4  ;;  %433 = vmatpush.msrb.mxu1 %v938_v21 }
  0x29   :  { %182 = vmatmul.f32.gmra.mxu2 %v43_v55  ;;  %402 = vmatpush.msrb.mxu0 %v343_v5  ;;  %v317_v55 = vld [vmem:[%s1146_s3 + $0x10] sm:$0xff] }
  0x2a   :  { %118 = vmatmul.f32.gmra.mxu0 %v33_v56  ;;  %599 = vmatpush.msrb.mxu2 %v343_v5  ;;  %v1029_v56 = vld [vmem:[%s1146_s3 + $0x130] sm:$0xff] }
  0x2b   :  { %150 = vmatmul.f32.gmra.mxu1 %v791_v29  ;;  %403 = vmatpush.msrb.mxu0 %v342_v7 }
  0x2c   :  { %600 = vmatpush.msrb.mxu2 %v342_v7  ;;  %374 = vmatpush.msra.mxu3 %v323_v24  ;;  %v1065_v7 = vld [vmem:[%s1146_s3 + $0x110] sm:$0xff] }
  0x2d   :  { %404 = vmatpush.msrb.mxu0 %v341_v9  ;;  %434 = vmatpush.msrb.mxu1 %v955_v25 }
  0x2e   :  { %601 = vmatpush.msrb.mxu2 %v341_v9  ;;  %375 = vmatpush.msra.mxu3 %v322_v30  ;;  %v1072_v9 = vld [vmem:[%s1146_s3 + $0x108] sm:$0xff] }
  0x2f   :  { %405 = vmatpush.msrb.mxu0 %v340_v11  ;;  %435 = vmatpush.msrb.mxu1 %v967_v31 }
  0x30   :  { %602 = vmatpush.msrb.mxu2 %v340_v11  ;;  %376 = vmatpush.msra.mxu3 %v321_v37  ;;  %v1078_v11 = vld [vmem:[%s1146_s3 + $0x100] sm:$0xff] }
  0x31   :  { %185 = vmatmul.f32.gmra.mxu2 %v44_v57  ;;  %406 = vmatpush.msrb.mxu0 %v339_v13 }
  0x32   :  { %121 = vmatmul.f32.gmra.mxu0 %v34_v58  ;;  %603 = vmatpush.msrb.mxu2 %v339_v13  ;;  %v316_v58 = vld [vmem:[%s1146_s3 + $0x8] sm:$0xff] }
  0x33   :  { %153 = vmatmul.f32.gmra.mxu1 %v39_v59  ;;  %407 = vmatpush.msrb.mxu0 %v338_v16  ;;  %v1038_v59 = vld [vmem:[%s1146_s3 + $0x128] sm:$0xff] }
  0x34   :  { %604 = vmatpush.msrb.mxu2 %v338_v16  ;;  %436 = vmatpush.msrb.mxu1 %v980_v38 }
  0x35   :  { %408 = vmatpush.msrb.mxu0 %v337_v19  ;;  %377 = vmatpush.msra.mxu3 %v320_v41 }
  0x36   :  { %605 = vmatpush.msrb.mxu2 %v337_v19  ;;  %437 = vmatpush.msrb.mxu1 %v992_v42 }
  0x37   :  { %409 = vmatpush.msrb.mxu0 %v336_v22  ;;  %378 = vmatpush.msra.mxu3 %v319_v45 }
  0x38   :  { %606 = vmatpush.msrb.mxu2 %v336_v22  ;;  %438 = vmatpush.msrb.mxu1 %v1004_v46 }
  0x39   :  { %188 = vmatmul.f32.gmra.mxu2 %v45_v60  ;;  %410 = vmatpush.msrb.mxu0 %v335_v26 }
  0x3a   :  { %124 = vmatmul.f32.gmra.mxu0 %v35_v61  ;;  %607 = vmatpush.msrb.mxu2 %v335_v26  ;;  %v315_v61 = vld [vmem:[%s1146_s3] sm:$0xff] }
  0x3b   :  { %156 = vmatmul.f32.gmra.mxu1 %v40_v62  ;;  %411 = vmatpush.msrb.mxu0 %v334_v33  ;;  %v1047_v62 = vld [vmem:[%s1146_s3 + $0x120] sm:$0xff] }
  0x3c   :  { %608 = vmatpush.msrb.mxu2 %v334_v33  ;;  %379 = vmatpush.msra.mxu3 %v318_v50 }
  0x3d   :  { %412 = vmatpush.msrb.mxu0 %v333_v39  ;;  %439 = vmatpush.msrb.mxu1 %v1018_v51 }
  0x3e   :  { %609 = vmatpush.msrb.mxu2 %v333_v39  ;;  %380 = vmatpush.msra.mxu3 %v317_v55 }
  0x3f   :  { %413 = vmatpush.msrb.mxu0 %v332_v43  ;;  %440 = vmatpush.msrb.mxu1 %v1029_v56 }
  0x40   :  { %610 = vmatpush.msrb.mxu2 %v332_v43  ;;  %381 = vmatpush.msra.mxu3 %v316_v58 }
  0x41   :  { %191 = vmatmul.f32.gmra.mxu2 %v46_v63  ;;  %414 = vmatpush.msrb.mxu0 %v331_v47 }
  0x42   :  { %127 = vmatmul.f32.gmra.mxu0 %v36_v0  ;;  %611 = vmatpush.msrb.mxu2 %v331_v47 }
  0x43   :  { %159 = vmatmul.f32.gmra.mxu1 %v41_v1  ;;  %382 = vmatpush.msra.mxu3 %v315_v61  ;;  %v1056_v1 = vld [vmem:[%s1146_s3 + $0x118] sm:$0xff] }
  0x44   :  { %441 = vmatpush.msrb.mxu1 %v1038_v59 }
  0x45   :  { %612 = vmatpush.msrb.mxu3 %v914_v15 }
  0x46   :  { %442 = vmatpush.msrb.mxu1 %v1047_v62 }
  0x47   :  { %613 = vmatpush.msrb.mxu3 %v926_v18 }
  0x48   :  { %443 = vmatpush.msrb.mxu1 %v1056_v1 }
  0x49   :  { %614 = vmatpush.msrb.mxu3 %v938_v21 }
  0x4a   :  { %444 = vmatpush.msrb.mxu1 %v1065_v7 }
  0x4b   :  { %615 = vmatpush.msrb.mxu3 %v955_v25 }
  0x4c   :  { %445 = vmatpush.msrb.mxu1 %v1072_v9 }
  0x4d   :  { %616 = vmatpush.msrb.mxu3 %v967_v31 }
  0x4e   :  { %446 = vmatpush.msrb.mxu1 %v1078_v11 }
  0x4f   :  { %617 = vmatpush.msrb.mxu3 %v980_v38 }
  0x51   :  { %618 = vmatpush.msrb.mxu3 %v992_v42 }
  0x53   :  { %619 = vmatpush.msrb.mxu3 %v1004_v46 }
  0x55   :  { %620 = vmatpush.msrb.mxu3 %v1018_v51 }
  0x57   :  { %621 = vmatpush.msrb.mxu3 %v1029_v56 }
  0x59   :  { %622 = vmatpush.msrb.mxu3 %v1038_v59 }
  0x5b   :  { %623 = vmatpush.msrb.mxu3 %v1047_v62 }
  0x5d   :  { %624 = vmatpush.msrb.mxu3 %v1056_v1 }
  0x5f   :  { %625 = vmatpush.msrb.mxu3 %v1065_v7 }
  0x61   :  { %626 = vmatpush.msrb.mxu3 %v1072_v9 }
  0x63   :  { %627 = vmatpush.msrb.mxu3 %v1078_v11 }
  0x9f   :  { %v116_v27 = vpop.f32.mrf.mxu0 }
  0xa0   :  { %v117_v35 = vadd.f32 %v946_v23, %v116_v27  ;;  %v148_v36 = vpop.f32.mrf.mxu1 }
  0xa2   :  { %v149_v40 = vadd.f32 %v148_v36, %v117_v35 }
  0xa4   :  { %v180_v44 = vpop.f32.mrf.mxu2 }
  0xa5   :  { %v1009_v48 = vadd.f32 %v180_v44, %v149_v40 }
  0xa7   :  { %v119_v49 = vpop.f32.mrf.mxu0  ;;  %v586_v52 = vmul.f32 -1.442695, %v1009_v48 }
  0xa8   :  { %v120_v53 = vadd.f32 %v946_v23, %v119_v49  ;;  %v151_v54 = vpop.f32.mrf.mxu1 }
  0xa9   :  { %631 = vpow2.f32 %v586_v52 }
  0xaa   :  { %v152_v57 = vadd.f32 %v151_v54, %v120_v53 }
  0xac   :  { %v183_v60 = vpop.f32.mrf.mxu2 }
  0xad   :  { %v1049_v63 = vadd.f32 %v183_v60, %v152_v57 }
  0xaf   :  { %v122_v0 = vpop.f32.mrf.mxu0  ;;  %v632_v2 = vpop.eup %631  ;;  %v587_v3 = vmul.f32 -1.442695, %v1049_v63 }
  0xb0   :  { %v123_v4 = vadd.f32 %v946_v23, %v122_v0  ;;  %v210_v5 = vadd.f32 1.0, %v632_v2  ;;  %v154_v6 = vpop.f32.mrf.mxu1 }
  0xb1   :  { %633 = vpow2.f32 %v587_v3 }
  0xb2   :  { %v155_v8 = vadd.f32 %v154_v6, %v123_v4  ;;  %635 = vrcp.f32 %v210_v5  ;;  %v226_v24 = vand.u32 2147483648, %v210_v5  ;;  %v224_v27 = vand.u32 2147483647, %v210_v5 }
  0xb3   :  { %vm220_vm1 = vweird.f32 %v210_v5 }
  0xb4   :  { %v186_v10 = vpop.f32.mrf.mxu2  ;;  %v227_v39 = vor.u32 1.1754944e-38, %v226_v24  ;;  %vm225_vm3 = vcmp.eq.f32.partialorder %v224_v27, 8.507059e+37 }
  0xb5   :  { %v1081_v12 = vadd.f32 %v186_v10, %v155_v8 }
  0xb7   :  { %v125_v13 = vpop.f32.mrf.mxu0  ;;  %v634_v14 = vpop.eup %633  ;;  %v588_v15 = vmul.f32 -1.442695, %v1081_v12 }
  0xb8   :  { %v126_v16 = vadd.f32 %v946_v23, %v125_v13  ;;  %v636_v17 = vpop.eup %635  ;;  %v211_v18 = vadd.f32 1.0, %v634_v14  ;;  %v157_v19 = vpop.f32.mrf.mxu1 }
  0xb9   :  { %v216_v20 = vmul.f32 %v636_v17, %v210_v5  ;;  %637 = vpow2.f32 %v588_v15  ;;  %vm221_vm0 = vweird.f32 %v636_v17 }
  0xba   :  { %v158_v21 = vadd.f32 %v157_v19, %v126_v16  ;;  %639 = vrcp.f32 %v211_v18  ;;  %vm222_vm2 = vmor %vm220_vm1, %vm221_vm0  ;;  %v239_v51 = vand.u32 2147483647, %v211_v18  ;;  %vm235_vm5 = vweird.f32 %v211_v18 }
  0xbb   :  { %v217_v22 = vsub.f32 1.0, %v216_v20 }
  0xbc   :  { %v189_v25 = vpop.f32.mrf.mxu2  ;;  %vm240_vm7 = vcmp.eq.f32.partialorder %v239_v51, 8.507059e+37 }
  0xbd   :  { %v218_v26 = vmul.f32 %v636_v17, %v217_v22  ;;  %v1090_v30 = vadd.f32 %v189_v25, %v158_v21 }
  0xbf   :  { %v128_v31 = vpop.f32.mrf.mxu0  ;;  %v638_v33 = vpop.eup %637  ;;  %v219_v35 = vadd.f32 %v636_v17, %v218_v26  ;;  %v589_v36 = vmul.f32 -1.442695, %v1090_v30 }
  0xc0   :  { %v129_v37 = vadd.f32 %v946_v23, %v128_v31  ;;  %v640_v38 = vpop.eup %639  ;;  %v212_v40 = vadd.f32 1.0, %v638_v33  ;;  %v160_v41 = vpop.f32.mrf.mxu1  ;;  %v241_v23 = vand.u32 2147483648, %v211_v18 }
  0xc1   :  { %v223_v42 = vsel %vm222_vm2, %v636_v17, %v219_v35  ;;  %v231_v43 = vmul.f32 %v640_v38, %v211_v18  ;;  %641 = vpow2.f32 %v589_v36  ;;  %vm236_vm4 = vweird.f32 %v640_v38 }
  0xc2   :  { %v228_v44 = vsel %vm225_vm3, %v227_v39, %v223_v42  ;;  %643 = vrcp.f32 %v212_v40  ;;  %v161_v47 = vadd.f32 %v160_v41, %v129_v37  ;;  %vm237_vm6 = vmor %vm235_vm5, %vm236_vm4  ;;  %v242_v56 = vor.u32 1.1754944e-38, %v241_v23  ;;  %v1113_v23 = vld [vmem:[%s1147_s4] ss:$0 sm:$0xff] }
  0xc3   :  { %v290_v45 = vmul.f32 %v228_v44, %v1009_v48  ;;  %v232_v46 = vsub.f32 1.0, %v231_v43  ;;  %v256_v0 = vand.u32 2147483648, %v212_v40  ;;  %v254_v3 = vand.u32 2147483647, %v212_v40 }
  0xc4   :  { %v192_v49 = vpop.f32.mrf.mxu2  ;;  %vm250_vm9 = vweird.f32 %v212_v40 }
  0xc5   :  { %295 = vst [vmem:[#allocation2 + $0x1] sm:$0xff] %v290_v45  ;;  %v233_v50 = vmul.f32 %v640_v38, %v232_v46  ;;  %v1099_v52 = vadd.f32 %v192_v49, %v161_v47  ;;  %415 = vmatmul.f32.vlgmr.msrb.gmra.mxu0 %v290_v45  ;;  %v257_v7 = vor.u32 1.1754944e-38, %v256_v0  ;;  %vm255_vm11 = vcmp.eq.f32.partialorder %v254_v3, 8.507059e+37 }
  0xc7   :  { %v642_v53 = vpop.eup %641  ;;  %v234_v54 = vadd.f32 %v640_v38, %v233_v50  ;;  %v590_v48 = vmul.f32 -1.442695, %v1099_v52 }
  0xc8   :  { %v644_v55 = vpop.eup %643  ;;  %v213_v57 = vadd.f32 1.0, %v642_v53 }
  0xc9   :  { %v238_v58 = vsel %vm237_vm6, %v640_v38, %v234_v54  ;;  %v246_v59 = vmul.f32 %v644_v55, %v212_v40  ;;  %645 = vpow2.f32 %v590_v48  ;;  %vm251_vm8 = vweird.f32 %v644_v55 }
  0xca   :  { %v243_v60 = vsel %vm240_vm7, %v242_v56, %v238_v58  ;;  %647 = vrcp.f32 %v213_v57  ;;  %vm252_vm10 = vmor %vm250_vm9, %vm251_vm8  ;;  %v271_v14 = vand.u32 2147483648, %v213_v57  ;;  %v269_v18 = vand.u32 2147483647, %v213_v57 }
  0xcb   :  { %v291_v61 = vmul.f32 %v243_v60, %v1049_v63  ;;  %v247_v62 = vsub.f32 1.0, %v246_v59  ;;  %vm265_vm13 = vweird.f32 %v213_v57 }
  0xcc   :  { %v300_v1 = vld [vmem:[#allocation2] sm:$0xff]  ;;  %v272_v21 = vor.u32 1.1754944e-38, %v271_v14  ;;  %vm270_vm15 = vcmp.eq.f32.partialorder %v269_v18, 8.507059e+37 }
  0xcd   :  { %296 = vst [vmem:[#allocation2 + $0x9] sm:$0xff] %v291_v61  ;;  %v248_v2 = vmul.f32 %v644_v55, %v247_v62  ;;  %383 = vmatmul.f32.vlgmr.msra.gmra.mxu3 %v300_v1  ;;  %418 = vmatmul.f32.gmra.mxu0 %v291_v61 }
  0xcf   :  { %v646_v4 = vpop.eup %645  ;;  %v249_v5 = vadd.f32 %v644_v55, %v248_v2 }
  0xd0   :  { %v648_v6 = vpop.eup %647  ;;  %v214_v8 = vadd.f32 1.0, %v646_v4 }
  0xd1   :  { %v253_v9 = vsel %vm252_vm10, %v644_v55, %v249_v5  ;;  %v261_v63 = vmul.f32 %v648_v6, %v213_v57  ;;  %vm266_vm12 = vweird.f32 %v648_v6 }
  0xd2   :  { %v258_v10 = vsel %vm255_vm11, %v257_v7, %v253_v9  ;;  %649 = vrcp.f32 %v214_v8  ;;  %vm267_vm14 = vmor %vm265_vm13, %vm266_vm12  ;;  %v286_v27 = vand.u32 2147483648, %v214_v8  ;;  %v284_v36 = vand.u32 2147483647, %v214_v8 }
  0xd3   :  { %v292_v11 = vmul.f32 %v258_v10, %v1081_v12  ;;  %v262_v13 = vsub.f32 1.0, %v261_v63  ;;  %vm280_vm1 = vweird.f32 %v214_v8 }
  0xd4   :  { %v301_v15 = vld [vmem:[#allocation2 + $0x8] sm:$0xff]  ;;  %v287_v39 = vor.u32 1.1754944e-38, %v286_v27  ;;  %vm285_vm3 = vcmp.eq.f32.partialorder %v284_v36, 8.507059e+37 }
  0xd5   :  { %v310_v16 = vld [vmem:[#allocation2 + $0x2] sm:$0xff]  ;;  %297 = vst [vmem:[#allocation2 + $0x11] sm:$0xfc] %v292_v11  ;;  %v263_v17 = vmul.f32 %v648_v6, %v262_v13  ;;  %386 = vmatmul.f32.gmra.mxu3 %v301_v15  ;;  %v311_v37 = vld [vmem:[#allocation2 + $0xa] sm:$0xff] }
  0xd6   :  { %447 = vmatmul.f32.vlgmr.msrb.gmra.mxu1 %v310_v16 }
  0xd7   :  { %v264_v19 = vadd.f32 %v648_v6, %v263_v17 }
  0xd8   :  { %v650_v20 = vpop.eup %649 }
  0xd9   :  { %v268_v22 = vsel %vm267_vm14, %v648_v6, %v264_v19  ;;  %v276_v24 = vmul.f32 %v650_v20, %v214_v8  ;;  %vm281_vm0 = vweird.f32 %v650_v20 }
  0xda   :  { %v273_v25 = vsel %vm270_vm15, %v272_v21, %v268_v22  ;;  %vm282_vm2 = vmor %vm280_vm1, %vm281_vm0 }
  0xdb   :  { %v293_v12 = vmul.f32 %v273_v25, %v1090_v30  ;;  %v277_v26 = vsub.f32 1.0, %v276_v24 }
  0xdc   :  { %v302_v31 = vld [vmem:[#allocation2 + $0x10] sm:$0xff] }
  0xdd   :  { %v307_v33 = vld [vmem:[#allocation2 + $0x11] sm:$0xff]  ;;  %298 = vst [vmem:[#allocation2 + $0x19] sm:$0xff] %v293_v12  ;;  %v278_v35 = vmul.f32 %v650_v20, %v277_v26  ;;  %389 = vmatmul.f32.gmra.mxu3 %v302_v31  ;;  %424 = vmatmul.f32.vlgmr.msrb.gmra.mxu2 %v293_v12 }
  0xde   :  { %421 = vmatmul.f32.gmra.mxu0 %v307_v33  ;;  %450 = vmatmul.f32.gmra.mxu1 %v311_v37 }
  0xdf   :  { %v279_v38 = vadd.f32 %v650_v20, %v278_v35 }
  0xe1   :  { %v283_v40 = vsel %vm282_vm2, %v650_v20, %v279_v38  ;;  %vm569_vm2 = vcmask 1041408  }
  0xe2   :  { %v288_v30 = vsel %vm285_vm3, %v287_v39, %v283_v40 }
  0xe3   :  { %v294_v41 = vmul.f32 %v288_v30, %v1099_v52 }
  0xe4   :  { %v303_v42 = vld [vmem:[#allocation2 + $0x18] sm:$0xff] }
  0xe5   :  { %v312_v43 = vld [vmem:[#allocation2 + $0x12] sm:$0xff]  ;;  %299 = vst [vmem:[#allocation2 + $0x21] sm:$0x3] %v294_v41  ;;  %392 = vmatmul.f32.gmra.mxu3 %v303_v42 }
  0xe6   :  { %453 = vmatmul.f32.gmra.mxu1 %v312_v43 }
  0xec   :  { %v304_v44 = vld [vmem:[#allocation2 + $0x20] sm:$0x3]  ;;  %v314_v47 = vld [vmem:[#allocation2 + $0x22] sm:$0x3] }
  0xed   :  { %v309_v45 = vld [vmem:[#allocation2 + $0x21] sm:$0x3]  ;;  %395 = vmatmul.f32.gmra.mxu3 %v304_v44 }
  0xee   :  { %427 = vmatmul.f32.gmra.mxu2 %v309_v45  ;;  %v313_v46 = vld [vmem:[#allocation2 + $0x1a] sm:$0xff] }
  0xf5   :  { %456 = vmatmul.f32.vlgmr.msrb.gmra.mxu3 %v313_v46 }
  0xfd   :  { %459 = vmatmul.f32.gmra.mxu3 %v314_v47 }
 0x142   :  { %v416_v49 = vpop.f32.mrf.mxu0 }
 0x14a   :  { %v419_v57 = vpop.f32.mrf.mxu0 }
 0x150   :  { %v384_v50 = vpop.f32.mrf.mxu3 }
 0x151   :  { %v385_v51 = vadd.f32 %v1113_v23, %v384_v50 }
 0x153   :  { %v448_v52 = vpop.f32.mrf.mxu1  ;;  %v417_v53 = vadd.f32 %v416_v49, %v385_v51 }
 0x155   :  { %v449_v54 = vadd.f32 %v448_v52, %v417_v53 }
 0x157   :  { %v591_v48 = vmul.f32 -1.442695, %v449_v54 }
 0x158   :  { %v387_v55 = vpop.f32.mrf.mxu3 }
 0x159   :  { %651 = vpow2.f32 %v591_v48  ;;  %v388_v56 = vadd.f32 %v1113_v23, %v387_v55 }
 0x15b   :  { %v420_v58 = vadd.f32 %v419_v57, %v388_v56  ;;  %v451_v59 = vpop.f32.mrf.mxu1  ;;  %v422_v3 = vpop.f32.mrf.mxu0 }
 0x15d   :  { %v452_v60 = vadd.f32 %v451_v59, %v420_v58  ;;  %v570_v59 = vrot.slane %v803_v32, 6 }
 0x15f   :  { %v652_v61 = vpop.eup %651  ;;  %v592_v62 = vmul.f32 -1.442695, %v452_v60 }
 0x160   :  { %v478_v0 = vadd.f32 1.0, %v652_v61  ;;  %v390_v1 = vpop.f32.mrf.mxu3  ;;  %v425_v38 = vpop.f32.mrf.mxu2 }
 0x161   :  { %653 = vpow2.f32 %v592_v62  ;;  %v391_v2 = vadd.f32 %v1113_v23, %v390_v1 }
 0x162   :  { %655 = vrcp.f32 %v478_v0  ;;  %v494_v14 = vand.u32 2147483648, %v478_v0  ;;  %v492_v16 = vand.u32 2147483647, %v478_v0  ;;  %vm488_vm5 = vweird.f32 %v478_v0 }
 0x163   :  { %v423_v4 = vadd.f32 %v422_v3, %v391_v2  ;;  %v454_v5 = vpop.f32.mrf.mxu1 }
 0x164   :  { %v495_v20 = vor.u32 1.1754944e-38, %v494_v14  ;;  %vm493_vm7 = vcmp.eq.f32.partialorder %v492_v16, 8.507059e+37 }
 0x165   :  { %v1118_v6 = vadd.f32 %v454_v5, %v423_v4 }
 0x167   :  { %v654_v7 = vpop.eup %653  ;;  %v593_v8 = vmul.f32 -1.442695, %v1118_v6 }
 0x168   :  { %v656_v9 = vpop.eup %655  ;;  %v479_v63 = vadd.f32 1.0, %v654_v7  ;;  %v393_v10 = vpop.f32.mrf.mxu3 }
 0x169   :  { %v484_v11 = vmul.f32 %v656_v9, %v478_v0  ;;  %657 = vpow2.f32 %v593_v8  ;;  %vm489_vm4 = vweird.f32 %v656_v9  ;;  %v394_v31 = vadd.f32 %v1113_v23, %v393_v10 }
 0x16a   :  { %659 = vrcp.f32 %v479_v63  ;;  %vm490_vm6 = vmor %vm488_vm5, %vm489_vm4  ;;  %v509_v33 = vand.u32 2147483648, %v479_v63  ;;  %v507_v37 = vand.u32 2147483647, %v479_v63  ;;  %vm503_vm9 = vweird.f32 %v479_v63 }
 0x16b   :  { %v485_v13 = vsub.f32 1.0, %v484_v11  ;;  %v426_v40 = vadd.f32 %v425_v38, %v394_v31 }
 0x16c   :  { %v510_v41 = vor.u32 1.1754944e-38, %v509_v33  ;;  %vm508_vm11 = vcmp.eq.f32.partialorder %v507_v37, 8.507059e+37 }
 0x16d   :  { %v486_v15 = vmul.f32 %v656_v9, %v485_v13 }
 0x16f   :  { %v658_v17 = vpop.eup %657  ;;  %v487_v18 = vadd.f32 %v656_v9, %v486_v15 }
 0x170   :  { %v660_v19 = vpop.eup %659  ;;  %v480_v21 = vadd.f32 1.0, %v658_v17  ;;  %v396_v22 = vpop.f32.mrf.mxu3 }
 0x171   :  { %v491_v24 = vsel %vm490_vm6, %v656_v9, %v487_v18  ;;  %v499_v25 = vmul.f32 %v660_v19, %v479_v63  ;;  %vm504_vm8 = vweird.f32 %v660_v19  ;;  %v397_v49 = vadd.f32 %v1113_v23, %v396_v22  ;;  %v428_v48 = vpop.f32.mrf.mxu2 }
 0x172   :  { %v496_v12 = vsel %vm493_vm7, %v495_v20, %v491_v24  ;;  %661 = vrcp.f32 %v480_v21  ;;  %vm505_vm10 = vmor %vm503_vm9, %vm504_vm8  ;;  %v522_v51 = vand.u32 2147483647, %v480_v21  ;;  %v524_v52 = vand.u32 2147483648, %v480_v21 }
 0x173   :  { %v558_v26 = vmul.f32 %v496_v12, %v449_v54  ;;  %v500_v27 = vsub.f32 1.0, %v499_v25  ;;  %vm518_vm13 = vweird.f32 %v480_v21  ;;  %v429_v56 = vadd.f32 %v428_v48, %v397_v49 }
 0x174   :  { %v525_v57 = vor.u32 1.1754944e-38, %v524_v52  ;;  %vm523_vm15 = vcmp.eq.f32.partialorder %v522_v51, 8.507059e+37 }
 0x175   :  { %v563_v35 = vadd.f32 %v558_v26, %v786_v28  ;;  %v501_v36 = vmul.f32 %v660_v19, %v500_v27 }
 0x177   :  { %565 = vst [vmem:[%s1148_s5] sm:$0xff] %v563_v35  ;;  %v502_v39 = vadd.f32 %v660_v19, %v501_v36 }
 0x178   :  { %v662_v30 = vpop.eup %661  ;;  %v457_v42 = vpop.f32.mrf.mxu3 }
 0x179   :  { %v506_v43 = vsel %vm505_vm10, %v660_v19, %v502_v39  ;;  %v514_v44 = vmul.f32 %v662_v30, %v480_v21  ;;  %v458_v45 = vadd.f32 %v457_v42, %v426_v40  ;;  %vm519_vm12 = vweird.f32 %v662_v30 }
 0x17a   :  { %v511_v28 = vsel %vm508_vm11, %v510_v41, %v506_v43  ;;  %vm520_vm14 = vmor %vm518_vm13, %vm519_vm12 }
 0x17b   :  { %v559_v46 = vmul.f32 %v511_v28, %v452_v60  ;;  %v515_v47 = vsub.f32 1.0, %v514_v44  ;;  %v594_v50 = vmul.f32 -1.442695, %v458_v45 }
 0x17d   :  { %v564_v53 = vadd.f32 %v559_v46, %v791_v29  ;;  %v516_v54 = vmul.f32 %v662_v30, %v515_v47  ;;  %663 = vpow2.f32 %v594_v50 }
 0x17f   :  { %566 = vst [vmem:[%s1148_s5 + $0x8] sm:$0xff] %v564_v53  ;;  %v517_v55 = vadd.f32 %v662_v30, %v516_v54 }
 0x180   :  { %v460_v58 = vpop.f32.mrf.mxu3 }
 0x181   :  { %v521_v23 = vsel %vm520_vm14, %v662_v30, %v517_v55  ;;  %v461_v60 = vadd.f32 %v460_v58, %v429_v56 }
 0x182   :  { %v526_v29 = vsel %vm523_vm15, %v525_v57, %v521_v23 }
 0x183   :  { %v664_v61 = vpop.eup %663  ;;  %v560_v62 = vmul.f32 %v526_v29, %v1118_v6  ;;  %v595_v0 = vmul.f32 -1.442695, %v461_v60  ;;  %v571_v6 = vrot.slane %v812_v34, 6 }
 0x184   :  { %v481_v1 = vadd.f32 1.0, %v664_v61 }
 0x185   :  { %v576_v2 = vadd.f32 %v570_v59, %v560_v62  ;;  %665 = vpow2.f32 %v595_v0  ;;  %v572_v17 = vsel %vm569_vm2, %v570_v59, %v571_v6 }
 0x186   :  { %667 = vrcp.f32 %v481_v1  ;;  %v539_v8 = vand.u32 2147483648, %v481_v1  ;;  %v537_v63 = vand.u32 2147483647, %v481_v1  ;;  %vm533_vm1 = vweird.f32 %v481_v1 }
 0x187   :  { %579 = vst [vmem:[%s1148_s5 + $0xe] sm:$0xfc] %v576_v2 }
 0x188   :  { %v540_v13 = vor.u32 1.1754944e-38, %v539_v8  ;;  %vm538_vm4 = vcmp.eq.f32.partialorder %v537_v63, 8.507059e+37 }
 0x18b   :  { %v666_v3 = vpop.eup %665 }
 0x18c   :  { %v668_v4 = vpop.eup %667  ;;  %v482_v5 = vadd.f32 1.0, %v666_v3 }
 0x18d   :  { %v529_v7 = vmul.f32 %v668_v4, %v481_v1  ;;  %vm534_vm0 = vweird.f32 %v668_v4 }
 0x18e   :  { %669 = vrcp.f32 %v482_v5  ;;  %vm535_vm3 = vmor %vm533_vm1, %vm534_vm0  ;;  %v554_v20 = vand.u32 2147483648, %v482_v5  ;;  %v552_v24 = vand.u32 2147483647, %v482_v5  ;;  %vm548_vm6 = vweird.f32 %v482_v5 }
 0x18f   :  { %v530_v32 = vsub.f32 1.0, %v529_v7 }
 0x190   :  { %v555_v25 = vor.u32 1.1754944e-38, %v554_v20  ;;  %vm553_vm8 = vcmp.eq.f32.partialorder %v552_v24, 8.507059e+37 }
 0x191   :  { %v531_v9 = vmul.f32 %v668_v4, %v530_v32 }
 0x193   :  { %v532_v10 = vadd.f32 %v668_v4, %v531_v9 }
 0x194   :  { %v670_v11 = vpop.eup %669 }
 0x195   :  { %v536_v14 = vsel %vm535_vm3, %v668_v4, %v532_v10  ;;  %v544_v15 = vmul.f32 %v670_v11, %v482_v5  ;;  %vm549_vm5 = vweird.f32 %v670_v11 }
 0x196   :  { %v541_v16 = vsel %vm538_vm4, %v540_v13, %v536_v14  ;;  %vm550_vm7 = vmor %vm548_vm6, %vm549_vm5 }
 0x197   :  { %v561_v18 = vmul.f32 %v541_v16, %v458_v45  ;;  %v545_v19 = vsub.f32 1.0, %v544_v15 }
 0x199   :  { %v577_v21 = vadd.f32 %v572_v17, %v561_v18  ;;  %v546_v22 = vmul.f32 %v670_v11, %v545_v19 }
 0x19b   :  { %580 = vst [vmem:[%s1148_s5 + $0x16] sm:$0xff] %v577_v21  ;;  %v547_v34 = vadd.f32 %v670_v11, %v546_v22 }
 0x19d   :  { %v551_v12 = vsel %vm550_vm7, %v670_v11, %v547_v34 }
 0x19e   :  { %v556_v26 = vsel %vm553_vm8, %v555_v25, %v551_v12 }
 0x19f   :  { %v562_v27 = vmul.f32 %v556_v26, %v461_v60 }
 0x1a1   :  { %v578_v31 = vadd.f32 %v571_v6, %v562_v27 }
 0x1a3   :  { %581 = vst [vmem:[%s1148_s5 + $0x1e] sm:$0x3] %v578_v31 }

</bundles_post_ra>
